<compile_context>
chip_gen: v6e
topology: v6e:2x2x1
jax: 0.10.0
libtpu: 0.0.40
codegen_flags: <defaults>
</compile_context>

<pallas_src>
import functools

import jax
import jax.numpy as jnp
from jax import lax
from jax.experimental import pallas as pl
from jax.experimental.pallas import tpu as pltpu

TAGS_PAD = 128  # lane-dense padded width of the head output


# -----------------------------------------------------------------------------
# Fused model kernel.  Grid = (batch, layer).  One encoder layer per grid step;
# the hidden state h is carried across the layer axis in a VMEM scratch.
# -----------------------------------------------------------------------------
def _fused_model_kernel(emb_ref, mask_ref, emb_g_ref, emb_b_ref,
                        wqkv_ref, bqkv_ref, wo_ref, bo_ref, ln1_g_ref, ln1_b_ref,
                        wi_ref, bi_ref, wo2_ref, bo2_ref, ln2_g_ref, ln2_b_ref,
                        head_w_ref, head_b_ref,
                        out_ref, h_ref,
                        *, n_heads, seq, eps):
    H = emb_ref.shape[1]
    dH = H // n_heads
    l = pl.program_id(1)
    last_l = pl.num_programs(1) - 1

    def layernorm(x, g, b):
        mean = jnp.mean(x, axis=-1, keepdims=True)
        var = jnp.mean((x - mean) ** 2, axis=-1, keepdims=True)
        return (x - mean) * lax.rsqrt(var + eps) * g + b

    def mm(x, w_bf16):
        # bf16 MXU operands (weights are pre-cast), f32 accumulation.
        return lax.dot_general(
            x.astype(jnp.bfloat16), w_bf16,
            dimension_numbers=(((1,), (0,)), ((), ())),
            preferred_element_type=jnp.float32)

    # Embedding LayerNorm once per batch block (layer 0 only).
    @pl.when(l == 0)
    def _():
        h_ref[...] = layernorm(emb_ref[...], emb_g_ref[...], emb_b_ref[...])

    h = h_ref[...]                                                     # (S, H)

    # Additive attention-mask bias, built in-kernel from the (1, S) f32 mask.
    bias = (1.0 - mask_ref[0]) * jnp.float32(-1e9)                     # (1, S)

    # ---- Encoder layer `l` --------------------------------------------------
    # Fused QKV projection (q columns were pre-scaled by 1/sqrt(dH)); one bf16
    # cast for the whole qkv slab, bf16 slices taken from it.
    qkv = mm(h, wqkv_ref[0]) + bqkv_ref[0]                             # (S, 3H) f32
    qkv_bf = qkv.astype(jnp.bfloat16)

    # Per-head QK^T (heads are contiguous lane groups, no transpose of k).
    scores = []
    for hd in range(n_heads):
        c0 = hd * dH
        q_bh = qkv_bf[:, c0:c0 + dH]                                   # (S, dH)
        k_bh = qkv_bf[:, H + c0:H + c0 + dH]
        s = lax.dot_general(
            q_bh, k_bh,
            dimension_numbers=(((1,), (1,)), ((), ())),
            preferred_element_type=jnp.float32)                        # (S, S)
        scores.append(s)

    # Batched softmax across all heads: one max/exp/sum/reciprocal per layer.
    s_all = jnp.concatenate(scores, axis=0) + bias                     # (nh*S, S)
    s_all = s_all - jnp.max(s_all, axis=-1, keepdims=True)
    p_all = jnp.exp(s_all)
    p_all = p_all * pl.reciprocal(jnp.sum(p_all, axis=-1, keepdims=True),
                                  approx=True)
    p_bf = p_all.astype(jnp.bfloat16)

    # Per-head P @ V, concatenated in-register along the lane axis (no VMEM
    # ctx scratch, no masked partial stores).
    ctx_parts = []
    for hd in range(n_heads):
        c0 = hd * dH
        v_bh = qkv_bf[:, 2 * H + c0:2 * H + c0 + dH]                   # (S, dH)
        p_bh = p_bf[hd * seq:(hd + 1) * seq, :]                        # (S, S)
        o = lax.dot_general(
            p_bh, v_bh,
            dimension_numbers=(((1,), (0,)), ((), ())),
            preferred_element_type=jnp.float32)                        # (S, dH)
        ctx_parts.append(o)
    ctx = jnp.concatenate(ctx_parts, axis=1)                           # (S, H)

    # Output projection + residual + LayerNorm.
    attn_out = mm(ctx, wo_ref[0]) + bo_ref[0]
    h = layernorm(attn_out + h, ln1_g_ref[0], ln1_b_ref[0])

    # Feed-forward (GELU) + residual + LayerNorm.
    ff = jax.nn.gelu(mm(h, wi_ref[0]) + bi_ref[0], approximate=True)
    ff = mm(ff, wo2_ref[0]) + bo2_ref[0]
    h = layernorm(ff + h, ln2_g_ref[0], ln2_b_ref[0])
    h_ref[...] = h

    # Dense head: Dropout(identity) -> Linear -> ReLU (last layer only).
    # Output is 128-lane padded -> lane-dense unmasked store.
    @pl.when(l == last_l)
    def _():
        logits = mm(h, head_w_ref[...]) + head_b_ref[...]              # (S, 128)
        out_ref[...] = jnp.maximum(logits, 0.0)


# -----------------------------------------------------------------------------
# Parameter init (deterministic, small BERT config)
# -----------------------------------------------------------------------------
def init_params(key, *, vocab, max_pos, type_vocab, hidden, n_layers, n_heads,
                intermediate, tags_num):
    def nrm(k, shape):
        return jax.random.normal(k, shape, jnp.float32) * 0.02

    keys = iter(jax.random.split(key, 8 + n_layers * 16))
    params = {
        "word_emb": nrm(next(keys), (vocab, hidden)),
        "pos_emb": nrm(next(keys), (max_pos, hidden)),
        "type_emb": nrm(next(keys), (type_vocab, hidden)),
        "emb_ln_g": jnp.ones((hidden,), jnp.float32),
        "emb_ln_b": jnp.zeros((hidden,), jnp.float32),
        "head_w": nrm(next(keys), (hidden, tags_num)),
        "head_b": jnp.zeros((tags_num,), jnp.float32),
        "layers": [],
    }
    for _ in range(n_layers):
        layer = {
            "wq": nrm(next(keys), (hidden, hidden)), "bq": jnp.zeros((hidden,)),
            "wk": nrm(next(keys), (hidden, hidden)), "bk": jnp.zeros((hidden,)),
            "wv": nrm(next(keys), (hidden, hidden)), "bv": jnp.zeros((hidden,)),
            "wo": nrm(next(keys), (hidden, hidden)), "bo": jnp.zeros((hidden,)),
            "ln1_g": jnp.ones((hidden,)), "ln1_b": jnp.zeros((hidden,)),
            "wi": nrm(next(keys), (hidden, intermediate)),
            "bi": jnp.zeros((intermediate,)),
            "wo2": nrm(next(keys), (intermediate, hidden)),
            "bo2": jnp.zeros((hidden,)),
            "ln2_g": jnp.ones((hidden,)), "ln2_b": jnp.zeros((hidden,)),
        }
        params["layers"].append(layer)
    return params


def _pack_params(params, *, n_heads, tags_pad):
    """Stack per-layer weights, fuse QKV, fold 1/sqrt(dH) into wq/bq, pre-cast
    matmul weights to bf16, zero-pad the head to a 128-lane output."""
    H = params["word_emb"].shape[1]
    dH = H // n_heads
    scale = 1.0 / float(dH) ** 0.5
    layers = params["layers"]
    bf = jnp.bfloat16

    wqkv = jnp.stack([jnp.concatenate(
        [l["wq"] * scale, l["wk"], l["wv"]], axis=1) for l in layers]).astype(bf)
    bqkv = jnp.stack([jnp.concatenate(
        [l["bq"] * scale, l["bk"], l["bv"]])[None, :] for l in layers])
    wo = jnp.stack([l["wo"] for l in layers]).astype(bf)
    bo = jnp.stack([l["bo"][None, :] for l in layers])
    ln1_g = jnp.stack([l["ln1_g"][None, :] for l in layers])
    ln1_b = jnp.stack([l["ln1_b"][None, :] for l in layers])
    wi = jnp.stack([l["wi"] for l in layers]).astype(bf)
    bi = jnp.stack([l["bi"][None, :] for l in layers])
    wo2 = jnp.stack([l["wo2"] for l in layers]).astype(bf)
    bo2 = jnp.stack([l["bo2"][None, :] for l in layers])
    ln2_g = jnp.stack([l["ln2_g"][None, :] for l in layers])
    ln2_b = jnp.stack([l["ln2_b"][None, :] for l in layers])

    tags = params["head_w"].shape[1]
    head_w = jnp.zeros((H, tags_pad), jnp.float32).at[:, :tags].set(
        params["head_w"]).astype(bf)
    head_b = jnp.zeros((1, tags_pad), jnp.float32).at[0, :tags].set(
        params["head_b"])

    return dict(wqkv=wqkv, bqkv=bqkv, wo=wo, bo=bo, ln1_g=ln1_g, ln1_b=ln1_b,
                wi=wi, bi=bi, wo2=wo2, bo2=bo2, ln2_g=ln2_g, ln2_b=ln2_b,
                head_w=head_w, head_b=head_b)


# -----------------------------------------------------------------------------
# SoftmaxModel forward
# -----------------------------------------------------------------------------
def softmax_model_forward(params, ids, mask, token_type_ids, *, n_heads):
    B, S = ids.shape
    H = params["word_emb"].shape[1]
    I = params["layers"][0]["wi"].shape[1]
    n_layers = len(params["layers"])
    tags_num = params["head_w"].shape[1]

    # Embedding lookups (gather is glue); everything else runs in the kernel.
    emb = (params["word_emb"][ids]
           + params["pos_emb"][jnp.arange(S)][None, :, :]
           + params["type_emb"][token_type_ids]).reshape(B * S, H)
    emb = emb.astype(jnp.float32)
    mask_f = mask.astype(jnp.float32).reshape(B, 1, S)                  # (B,1,S)

    p = _pack_params(params, n_heads=n_heads, tags_pad=TAGS_PAD)

    in_arrays = [
        emb, mask_f,
        params["emb_ln_g"].reshape(1, H), params["emb_ln_b"].reshape(1, H),
        p["wqkv"], p["bqkv"], p["wo"], p["bo"], p["ln1_g"], p["ln1_b"],
        p["wi"], p["bi"], p["wo2"], p["bo2"], p["ln2_g"], p["ln2_b"],
        p["head_w"], p["head_b"],
    ]

    batch_blk = lambda shape: pl.BlockSpec(shape, lambda b, l: (b,) + (0,) * (len(shape) - 1))
    layer_blk = lambda shape: pl.BlockSpec(shape, lambda b, l: (l,) + (0,) * (len(shape) - 1))
    const_blk = lambda shape: pl.BlockSpec(shape, lambda b, l, _n=len(shape): (0,) * _n)

    in_specs = [
        batch_blk((S, H)),          # emb
        batch_blk((1, 1, S)),       # mask
        const_blk((1, H)),          # emb_ln_g
        const_blk((1, H)),          # emb_ln_b
        layer_blk((1, H, 3 * H)),   # wqkv
        layer_blk((1, 1, 3 * H)),   # bqkv
        layer_blk((1, H, H)),       # wo
        layer_blk((1, 1, H)),       # bo
        layer_blk((1, 1, H)),       # ln1_g
        layer_blk((1, 1, H)),       # ln1_b
        layer_blk((1, H, I)),       # wi
        layer_blk((1, 1, I)),       # bi
        layer_blk((1, I, H)),       # wo2
        layer_blk((1, 1, H)),       # bo2
        layer_blk((1, 1, H)),       # ln2_g
        layer_blk((1, 1, H)),       # ln2_b
        const_blk((H, TAGS_PAD)),   # head_w
        const_blk((1, TAGS_PAD)),   # head_b
    ]

    kernel = functools.partial(_fused_model_kernel, n_heads=n_heads,
                               seq=S, eps=1e-12)
    out = pl.pallas_call(
        kernel,
        out_shape=jax.ShapeDtypeStruct((B * S, TAGS_PAD), jnp.float32),
        grid=(B, n_layers),
        in_specs=in_specs,
        out_specs=batch_blk((S, TAGS_PAD)),
        scratch_shapes=[pltpu.VMEM((S, H), jnp.float32)],               # carried h
        compiler_params=pltpu.CompilerParams(
            dimension_semantics=("parallel", "arbitrary"),
            vmem_limit_bytes=32 * 1024 * 1024),
    )(*in_arrays)

    return out[:, :tags_num].reshape(B, S, tags_num)


# -----------------------------------------------------------------------------
if __name__ == "__main__":
    # Small, forward-consistent shapes.
    B, S = 2, 8
    VOCAB, MAX_POS, TYPE_VOCAB = 100, 16, 2
    HIDDEN, N_LAYERS, N_HEADS, INTERMEDIATE = 32, 2, 2, 64
    TAGS_NUM = 5

    key = jax.random.PRNGKey(0)
    k_par, k_ids, k_tt = jax.random.split(key, 3)

    params = init_params(k_par, vocab=VOCAB, max_pos=MAX_POS,
                         type_vocab=TYPE_VOCAB, hidden=HIDDEN,
                         n_layers=N_LAYERS, n_heads=N_HEADS,
                         intermediate=INTERMEDIATE, tags_num=TAGS_NUM)

    ids = jax.random.randint(k_ids, (B, S), 0, VOCAB, dtype=jnp.int32)
    # First sequence fully attended; second has last two tokens masked.
    mask = jnp.array([[1] * S, [1] * (S - 2) + [0, 0]], dtype=jnp.int32)
    token_type_ids = jax.random.randint(k_tt, (B, S), 0, TYPE_VOCAB,
                                        dtype=jnp.int32)

    fwd = jax.jit(functools.partial(softmax_model_forward, n_heads=N_HEADS))
    out = fwd(params, ids, mask, token_type_ids)
    out = jax.block_until_ready(out)

    assert out.shape == (B, S, TAGS_NUM)
    assert bool(jnp.all(out >= 0.0))  # ReLU output is non-negative
    assert bool(jnp.all(jnp.isfinite(out)))
    print("KERNEL_OK")
</pallas_src>

<mosaic_0001>
module attributes {stable_mosaic.version = 11 : i64} {
  func.func @_fused_model_kernel(%arg0: i32, %arg1: i32, %arg2: memref<8x32xf32, #tpu.memory_space<vmem>>, %arg3: memref<1x1x8xf32, #tpu.memory_space<vmem>>, %arg4: memref<1x32xf32, #tpu.memory_space<vmem>>, %arg5: memref<1x32xf32, #tpu.memory_space<vmem>>, %arg6: memref<1x32x96xbf16, #tpu.memory_space<vmem>>, %arg7: memref<1x1x96xf32, #tpu.memory_space<vmem>>, %arg8: memref<1x32x32xbf16, #tpu.memory_space<vmem>>, %arg9: memref<1x1x32xf32, #tpu.memory_space<vmem>>, %arg10: memref<1x1x32xf32, #tpu.memory_space<vmem>>, %arg11: memref<1x1x32xf32, #tpu.memory_space<vmem>>, %arg12: memref<1x32x64xbf16, #tpu.memory_space<vmem>>, %arg13: memref<1x1x64xf32, #tpu.memory_space<vmem>>, %arg14: memref<1x64x32xbf16, #tpu.memory_space<vmem>>, %arg15: memref<1x1x32xf32, #tpu.memory_space<vmem>>, %arg16: memref<1x1x32xf32, #tpu.memory_space<vmem>>, %arg17: memref<1x1x32xf32, #tpu.memory_space<vmem>>, %arg18: memref<32x128xbf16, #tpu.memory_space<vmem>>, %arg19: memref<1x128xf32, #tpu.memory_space<vmem>>, %arg20: memref<8x128xf32, #tpu.memory_space<vmem>>, %arg21: memref<8x32xf32, #tpu.memory_space<vmem>>) attributes {dimension_semantics = [#tpu.dimension_semantics<parallel>, #tpu.dimension_semantics<arbitrary>], iteration_bounds = array<i64: 2, 2>, scalar_prefetch = 0 : i64, scratch_operands = 1 : i64, tpu.core_type = #tpu.core_type<tc>, window_params = [{transform_indices = @transform_0, window_bounds = array<i64: 8, 32>}, {transform_indices = @transform_1, window_bounds = array<i64: 1, 1, 8>}, {pipeline_mode = #tpu.pipeline_mode<synchronous>, transform_indices = @transform_2, window_bounds = array<i64: 1, 32>}, {pipeline_mode = #tpu.pipeline_mode<synchronous>, transform_indices = @transform_3, window_bounds = array<i64: 1, 32>}, {transform_indices = @transform_4, window_bounds = array<i64: 1, 32, 96>}, {transform_indices = @transform_5, window_bounds = array<i64: 1, 1, 96>}, {transform_indices = @transform_6, window_bounds = array<i64: 1, 32, 32>}, {transform_indices = @transform_7, window_bounds = array<i64: 1, 1, 32>}, {transform_indices = @transform_8, window_bounds = array<i64: 1, 1, 32>}, {transform_indices = @transform_9, window_bounds = array<i64: 1, 1, 32>}, {transform_indices = @transform_10, window_bounds = array<i64: 1, 32, 64>}, {transform_indices = @transform_11, window_bounds = array<i64: 1, 1, 64>}, {transform_indices = @transform_12, window_bounds = array<i64: 1, 64, 32>}, {transform_indices = @transform_13, window_bounds = array<i64: 1, 1, 32>}, {transform_indices = @transform_14, window_bounds = array<i64: 1, 1, 32>}, {transform_indices = @transform_15, window_bounds = array<i64: 1, 1, 32>}, {pipeline_mode = #tpu.pipeline_mode<synchronous>, transform_indices = @transform_16, window_bounds = array<i64: 32, 128>}, {pipeline_mode = #tpu.pipeline_mode<synchronous>, transform_indices = @transform_17, window_bounds = array<i64: 1, 128>}, {transform_indices = @transform_18, window_bounds = array<i64: 8, 128>}]} {
    %c0_i32 = arith.constant 0 : i32
    %0 = arith.cmpi eq, %arg1, %c0_i32 : i32
    %1 = arith.extui %0 : i1 to i32
    %c0_i32_0 = arith.constant 0 : i32
    %2 = arith.cmpi ne, %1, %c0_i32_0 : i32
    scf.if %2 {
      %c0_69 = arith.constant 0 : index
      %c0_70 = arith.constant 0 : index
      %141 = vector.load %arg2[%c0_69, %c0_70] : memref<8x32xf32, #tpu.memory_space<vmem>>, vector<8x32xf32>
      %c0_71 = arith.constant 0 : index
      %c0_72 = arith.constant 0 : index
      %142 = vector.load %arg4[%c0_71, %c0_72] : memref<1x32xf32, #tpu.memory_space<vmem>>, vector<1x32xf32>
      %c0_73 = arith.constant 0 : index
      %c0_74 = arith.constant 0 : index
      %143 = vector.load %arg5[%c0_73, %c0_74] : memref<1x32xf32, #tpu.memory_space<vmem>>, vector<1x32xf32>
      %cst_75 = arith.constant dense<0.000000e+00> : vector<8xf32>
      %144 = vector.multi_reduction <add>, %141, %cst_75 [1] : vector<8x32xf32> to vector<8xf32>
      %145 = vector.shape_cast %144 : vector<8xf32> to vector<8x1xf32>
      %cst_76 = arith.constant 3.200000e+01 : f32
      %146 = vector.broadcast %cst_76 : f32 to vector<8x1xf32>
      %147 = arith.divf %145, %146 : vector<8x1xf32>
      %148 = vector.broadcast %147 : vector<8x1xf32> to vector<8x32xf32>
      %149 = arith.subf %141, %148 : vector<8x32xf32>
      %150 = arith.mulf %149, %149 : vector<8x32xf32>
      %cst_77 = arith.constant dense<0.000000e+00> : vector<8xf32>
      %151 = vector.multi_reduction <add>, %150, %cst_77 [1] : vector<8x32xf32> to vector<8xf32>
      %152 = vector.shape_cast %151 : vector<8xf32> to vector<8x1xf32>
      %cst_78 = arith.constant 3.200000e+01 : f32
      %153 = vector.broadcast %cst_78 : f32 to vector<8x1xf32>
      %154 = arith.divf %152, %153 : vector<8x1xf32>
      %155 = vector.broadcast %147 : vector<8x1xf32> to vector<8x32xf32>
      %156 = arith.subf %141, %155 : vector<8x32xf32>
      %cst_79 = arith.constant 9.99999996E-13 : f32
      %157 = vector.broadcast %cst_79 : f32 to vector<8x1xf32>
      %158 = arith.addf %154, %157 : vector<8x1xf32>
      %159 = math.rsqrt %158 : vector<8x1xf32>
      %160 = vector.broadcast %159 : vector<8x1xf32> to vector<8x32xf32>
      %161 = arith.mulf %156, %160 : vector<8x32xf32>
      %162 = vector.broadcast %142 : vector<1x32xf32> to vector<8x32xf32>
      %163 = arith.mulf %161, %162 : vector<8x32xf32>
      %164 = vector.broadcast %143 : vector<1x32xf32> to vector<8x32xf32>
      %165 = arith.addf %163, %164 : vector<8x32xf32>
      %c0_80 = arith.constant 0 : index
      %c0_81 = arith.constant 0 : index
      %166 = vector.load %arg21[%c0_80, %c0_81] : memref<8x32xf32, #tpu.memory_space<vmem>>, vector<8x32xf32>
      tpu.vector_store %arg21[%c0_80, %c0_81], %165 {strides = array<i32>} : memref<8x32xf32, #tpu.memory_space<vmem>>, vector<8x32xf32>,
    } else {
    }
    %c0 = arith.constant 0 : index
    %c0_1 = arith.constant 0 : index
    %3 = vector.load %arg21[%c0, %c0_1] : memref<8x32xf32, #tpu.memory_space<vmem>>, vector<8x32xf32>
    %c0_2 = arith.constant 0 : index
    %c0_3 = arith.constant 0 : index
    %c0_4 = arith.constant 0 : index
    %4 = vector.load %arg3[%c0_2, %c0_3, %c0_4] : memref<1x1x8xf32, #tpu.memory_space<vmem>>, vector<1x1x8xf32>
    %5 = vector.shape_cast %4 : vector<1x1x8xf32> to vector<1x8xf32>
    %cst = arith.constant 1.000000e+00 : f32
    %6 = vector.broadcast %cst : f32 to vector<1x8xf32>
    %7 = arith.subf %6, %5 : vector<1x8xf32>
    %cst_5 = arith.constant -1.000000e+09 : f32
    %8 = vector.broadcast %cst_5 : f32 to vector<1x8xf32>
    %9 = arith.mulf %7, %8 : vector<1x8xf32>
    %c0_6 = arith.constant 0 : index
    %c0_7 = arith.constant 0 : index
    %c0_8 = arith.constant 0 : index
    %10 = vector.load %arg6[%c0_6, %c0_7, %c0_8] : memref<1x32x96xbf16, #tpu.memory_space<vmem>>, vector<1x32x96xbf16>
    %11 = vector.shape_cast %10 : vector<1x32x96xbf16> to vector<32x96xbf16>
    %12 = arith.truncf %3 : vector<8x32xf32> to vector<8x32xbf16>
    %cst_9 = arith.constant dense<0.000000e+00> : vector<8x96xf32>
    %13 = tpu.matmul %12, %11, %cst_9 {dimension_numbers = #tpu.dot_dimension_numbers<[1], [0], [0], [1], [0, 0, 1, 1], [], []>} : vector<8x32xbf16>, vector<32x96xbf16>, vector<8x96xf32> -> vector<8x96xf32>
    %c0_10 = arith.constant 0 : index
    %c0_11 = arith.constant 0 : index
    %c0_12 = arith.constant 0 : index
    %14 = vector.load %arg7[%c0_10, %c0_11, %c0_12] : memref<1x1x96xf32, #tpu.memory_space<vmem>>, vector<1x1x96xf32>
    %15 = vector.shape_cast %14 : vector<1x1x96xf32> to vector<1x96xf32>
    %16 = vector.broadcast %15 : vector<1x96xf32> to vector<8x96xf32>
    %17 = arith.addf %13, %16 : vector<8x96xf32>
    %18 = arith.truncf %17 : vector<8x96xf32> to vector<8x96xbf16>
    %19 = vector.extract_strided_slice %18 {offsets = [0, 0], sizes = [8, 16], strides = [1, 1]} : vector<8x96xbf16> to vector<8x16xbf16>
    %20 = vector.extract_strided_slice %18 {offsets = [0, 32], sizes = [8, 16], strides = [1, 1]} : vector<8x96xbf16> to vector<8x16xbf16>
    %cst_13 = arith.constant dense<0.000000e+00> : vector<8x8xf32>
    %21 = tpu.matmul %19, %20, %cst_13 {dimension_numbers = #tpu.dot_dimension_numbers<[1], [1], [0], [0], [0, 0, 1, 0], [], []>} : vector<8x16xbf16>, vector<8x16xbf16>, vector<8x8xf32> -> vector<8x8xf32>
    %22 = vector.extract_strided_slice %18 {offsets = [0, 16], sizes = [8, 16], strides = [1, 1]} : vector<8x96xbf16> to vector<8x16xbf16>
    %23 = vector.extract_strided_slice %18 {offsets = [0, 48], sizes = [8, 16], strides = [1, 1]} : vector<8x96xbf16> to vector<8x16xbf16>
    %cst_14 = arith.constant dense<0.000000e+00> : vector<8x8xf32>
    %24 = tpu.matmul %22, %23, %cst_14 {dimension_numbers = #tpu.dot_dimension_numbers<[1], [1], [0], [0], [0, 0, 1, 0], [], []>} : vector<8x16xbf16>, vector<8x16xbf16>, vector<8x8xf32> -> vector<8x8xf32>
    %25 = tpu.concatenate %21, %24 in 0 : vector<8x8xf32>, vector<8x8xf32> -> vector<16x8xf32>
    %26 = vector.broadcast %9 : vector<1x8xf32> to vector<16x8xf32>
    %27 = arith.addf %25, %26 : vector<16x8xf32>
    %cst_15 = arith.constant dense<0xFF800000> : vector<16xf32>
    %28 = vector.multi_reduction <maximumf>, %27, %cst_15 [1] : vector<16x8xf32> to vector<16xf32>
    %29 = vector.shape_cast %28 : vector<16xf32> to vector<16x1xf32>
    %30 = vector.broadcast %29 : vector<16x1xf32> to vector<16x8xf32>
    %31 = arith.subf %27, %30 : vector<16x8xf32>
    %32 = math.exp %31 : vector<16x8xf32>
    %cst_16 = arith.constant dense<0.000000e+00> : vector<16xf32>
    %33 = vector.multi_reduction <add>, %32, %cst_16 [1] : vector<16x8xf32> to vector<16xf32>
    %34 = vector.shape_cast %33 : vector<16xf32> to vector<16x1xf32>
    %35 = tpu.reciprocal %34 {approx = true} : vector<16x1xf32> -> vector<16x1xf32>
    %36 = vector.broadcast %35 : vector<16x1xf32> to vector<16x8xf32>
    %37 = arith.mulf %32, %36 : vector<16x8xf32>
    %38 = arith.truncf %37 : vector<16x8xf32> to vector<16x8xbf16>
    %39 = vector.extract_strided_slice %18 {offsets = [0, 64], sizes = [8, 16], strides = [1, 1]} : vector<8x96xbf16> to vector<8x16xbf16>
    %40 = vector.extract_strided_slice %38 {offsets = [0, 0], sizes = [8, 8], strides = [1, 1]} : vector<16x8xbf16> to vector<8x8xbf16>
    %cst_17 = arith.constant dense<0.000000e+00> : vector<8x16xf32>
    %41 = tpu.matmul %40, %39, %cst_17 {dimension_numbers = #tpu.dot_dimension_numbers<[1], [0], [0], [1], [0, 0, 1, 1], [], []>} : vector<8x8xbf16>, vector<8x16xbf16>, vector<8x16xf32> -> vector<8x16xf32>
    %42 = vector.extract_strided_slice %18 {offsets = [0, 80], sizes = [8, 16], strides = [1, 1]} : vector<8x96xbf16> to vector<8x16xbf16>
    %43 = vector.extract_strided_slice %38 {offsets = [8, 0], sizes = [8, 8], strides = [1, 1]} : vector<16x8xbf16> to vector<8x8xbf16>
    %cst_18 = arith.constant dense<0.000000e+00> : vector<8x16xf32>
    %44 = tpu.matmul %43, %42, %cst_18 {dimension_numbers = #tpu.dot_dimension_numbers<[1], [0], [0], [1], [0, 0, 1, 1], [], []>} : vector<8x8xbf16>, vector<8x16xbf16>, vector<8x16xf32> -> vector<8x16xf32>
    %45 = tpu.concatenate %41, %44 in 1 : vector<8x16xf32>, vector<8x16xf32> -> vector<8x32xf32>
    %c0_19 = arith.constant 0 : index
    %c0_20 = arith.constant 0 : index
    %c0_21 = arith.constant 0 : index
    %46 = vector.load %arg8[%c0_19, %c0_20, %c0_21] : memref<1x32x32xbf16, #tpu.memory_space<vmem>>, vector<1x32x32xbf16>
    %47 = vector.shape_cast %46 : vector<1x32x32xbf16> to vector<32x32xbf16>
    %48 = arith.truncf %45 : vector<8x32xf32> to vector<8x32xbf16>
    %cst_22 = arith.constant dense<0.000000e+00> : vector<8x32xf32>
    %49 = tpu.matmul %48, %47, %cst_22 {dimension_numbers = #tpu.dot_dimension_numbers<[1], [0], [0], [1], [0, 0, 1, 1], [], []>} : vector<8x32xbf16>, vector<32x32xbf16>, vector<8x32xf32> -> vector<8x32xf32>
    %c0_23 = arith.constant 0 : index
    %c0_24 = arith.constant 0 : index
    %c0_25 = arith.constant 0 : index
    %50 = vector.load %arg9[%c0_23, %c0_24, %c0_25] : memref<1x1x32xf32, #tpu.memory_space<vmem>>, vector<1x1x32xf32>
    %51 = vector.shape_cast %50 : vector<1x1x32xf32> to vector<1x32xf32>
    %52 = vector.broadcast %51 : vector<1x32xf32> to vector<8x32xf32>
    %53 = arith.addf %49, %52 : vector<8x32xf32>
    %54 = arith.addf %53, %3 : vector<8x32xf32>
    %c0_26 = arith.constant 0 : index
    %c0_27 = arith.constant 0 : index
    %c0_28 = arith.constant 0 : index
    %55 = vector.load %arg10[%c0_26, %c0_27, %c0_28] : memref<1x1x32xf32, #tpu.memory_space<vmem>>, vector<1x1x32xf32>
    %56 = vector.shape_cast %55 : vector<1x1x32xf32> to vector<1x32xf32>
    %c0_29 = arith.constant 0 : index
    %c0_30 = arith.constant 0 : index
    %c0_31 = arith.constant 0 : index
    %57 = vector.load %arg11[%c0_29, %c0_30, %c0_31] : memref<1x1x32xf32, #tpu.memory_space<vmem>>, vector<1x1x32xf32>
    %58 = vector.shape_cast %57 : vector<1x1x32xf32> to vector<1x32xf32>
    %cst_32 = arith.constant dense<0.000000e+00> : vector<8xf32>
    %59 = vector.multi_reduction <add>, %54, %cst_32 [1] : vector<8x32xf32> to vector<8xf32>
    %60 = vector.shape_cast %59 : vector<8xf32> to vector<8x1xf32>
    %cst_33 = arith.constant 3.200000e+01 : f32
    %61 = vector.broadcast %cst_33 : f32 to vector<8x1xf32>
    %62 = arith.divf %60, %61 : vector<8x1xf32>
    %63 = vector.broadcast %62 : vector<8x1xf32> to vector<8x32xf32>
    %64 = arith.subf %54, %63 : vector<8x32xf32>
    %65 = arith.mulf %64, %64 : vector<8x32xf32>
    %cst_34 = arith.constant dense<0.000000e+00> : vector<8xf32>
    %66 = vector.multi_reduction <add>, %65, %cst_34 [1] : vector<8x32xf32> to vector<8xf32>
    %67 = vector.shape_cast %66 : vector<8xf32> to vector<8x1xf32>
    %cst_35 = arith.constant 3.200000e+01 : f32
    %68 = vector.broadcast %cst_35 : f32 to vector<8x1xf32>
    %69 = arith.divf %67, %68 : vector<8x1xf32>
    %70 = vector.broadcast %62 : vector<8x1xf32> to vector<8x32xf32>
    %71 = arith.subf %54, %70 : vector<8x32xf32>
    %cst_36 = arith.constant 9.99999996E-13 : f32
    %72 = vector.broadcast %cst_36 : f32 to vector<8x1xf32>
    %73 = arith.addf %69, %72 : vector<8x1xf32>
    %74 = math.rsqrt %73 : vector<8x1xf32>
    %75 = vector.broadcast %74 : vector<8x1xf32> to vector<8x32xf32>
    %76 = arith.mulf %71, %75 : vector<8x32xf32>
    %77 = vector.broadcast %56 : vector<1x32xf32> to vector<8x32xf32>
    %78 = arith.mulf %76, %77 : vector<8x32xf32>
    %79 = vector.broadcast %58 : vector<1x32xf32> to vector<8x32xf32>
    %80 = arith.addf %78, %79 : vector<8x32xf32>
    %c0_37 = arith.constant 0 : index
    %c0_38 = arith.constant 0 : index
    %c0_39 = arith.constant 0 : index
    %81 = vector.load %arg12[%c0_37, %c0_38, %c0_39] : memref<1x32x64xbf16, #tpu.memory_space<vmem>>, vector<1x32x64xbf16>
    %82 = vector.shape_cast %81 : vector<1x32x64xbf16> to vector<32x64xbf16>
    %83 = arith.truncf %80 : vector<8x32xf32> to vector<8x32xbf16>
    %cst_40 = arith.constant dense<0.000000e+00> : vector<8x64xf32>
    %84 = tpu.matmul %83, %82, %cst_40 {dimension_numbers = #tpu.dot_dimension_numbers<[1], [0], [0], [1], [0, 0, 1, 1], [], []>} : vector<8x32xbf16>, vector<32x64xbf16>, vector<8x64xf32> -> vector<8x64xf32>
    %c0_41 = arith.constant 0 : index
    %c0_42 = arith.constant 0 : index
    %c0_43 = arith.constant 0 : index
    %85 = vector.load %arg13[%c0_41, %c0_42, %c0_43] : memref<1x1x64xf32, #tpu.memory_space<vmem>>, vector<1x1x64xf32>
    %86 = vector.shape_cast %85 : vector<1x1x64xf32> to vector<1x64xf32>
    %87 = vector.broadcast %86 : vector<1x64xf32> to vector<8x64xf32>
    %88 = arith.addf %84, %87 : vector<8x64xf32>
    %89 = arith.mulf %88, %88 : vector<8x64xf32>
    %90 = arith.mulf %88, %89 : vector<8x64xf32>
    %cst_44 = arith.constant 4.471500e-02 : f32
    %91 = vector.broadcast %cst_44 : f32 to vector<8x64xf32>
    %92 = arith.mulf %91, %90 : vector<8x64xf32>
    %93 = arith.addf %88, %92 : vector<8x64xf32>
    %cst_45 = arith.constant 0.797884583 : f32
    %94 = vector.broadcast %cst_45 : f32 to vector<8x64xf32>
    %95 = arith.mulf %94, %93 : vector<8x64xf32>
    %96 = math.tanh %95 : vector<8x64xf32>
    %cst_46 = arith.constant 1.000000e+00 : f32
    %97 = vector.broadcast %cst_46 : f32 to vector<8x64xf32>
    %98 = arith.addf %97, %96 : vector<8x64xf32>
    %cst_47 = arith.constant 5.000000e-01 : f32
    %99 = vector.broadcast %cst_47 : f32 to vector<8x64xf32>
    %100 = arith.mulf %99, %98 : vector<8x64xf32>
    %101 = arith.mulf %88, %100 : vector<8x64xf32>
    %c0_48 = arith.constant 0 : index
    %c0_49 = arith.constant 0 : index
    %c0_50 = arith.constant 0 : index
    %102 = vector.load %arg14[%c0_48, %c0_49, %c0_50] : memref<1x64x32xbf16, #tpu.memory_space<vmem>>, vector<1x64x32xbf16>
    %103 = vector.shape_cast %102 : vector<1x64x32xbf16> to vector<64x32xbf16>
    %104 = arith.truncf %101 : vector<8x64xf32> to vector<8x64xbf16>
    %cst_51 = arith.constant dense<0.000000e+00> : vector<8x32xf32>
    %105 = tpu.matmul %104, %103, %cst_51 {dimension_numbers = #tpu.dot_dimension_numbers<[1], [0], [0], [1], [0, 0, 1, 1], [], []>} : vector<8x64xbf16>, vector<64x32xbf16>, vector<8x32xf32> -> vector<8x32xf32>
    %c0_52 = arith.constant 0 : index
    %c0_53 = arith.constant 0 : index
    %c0_54 = arith.constant 0 : index
    %106 = vector.load %arg15[%c0_52, %c0_53, %c0_54] : memref<1x1x32xf32, #tpu.memory_space<vmem>>, vector<1x1x32xf32>
    %107 = vector.shape_cast %106 : vector<1x1x32xf32> to vector<1x32xf32>
    %108 = vector.broadcast %107 : vector<1x32xf32> to vector<8x32xf32>
    %109 = arith.addf %105, %108 : vector<8x32xf32>
    %110 = arith.addf %109, %80 : vector<8x32xf32>
    %c0_55 = arith.constant 0 : index
    %c0_56 = arith.constant 0 : index
    %c0_57 = arith.constant 0 : index
    %111 = vector.load %arg16[%c0_55, %c0_56, %c0_57] : memref<1x1x32xf32, #tpu.memory_space<vmem>>, vector<1x1x32xf32>
    %112 = vector.shape_cast %111 : vector<1x1x32xf32> to vector<1x32xf32>
    %c0_58 = arith.constant 0 : index
    %c0_59 = arith.constant 0 : index
    %c0_60 = arith.constant 0 : index
    %113 = vector.load %arg17[%c0_58, %c0_59, %c0_60] : memref<1x1x32xf32, #tpu.memory_space<vmem>>, vector<1x1x32xf32>
    %114 = vector.shape_cast %113 : vector<1x1x32xf32> to vector<1x32xf32>
    %cst_61 = arith.constant dense<0.000000e+00> : vector<8xf32>
    %115 = vector.multi_reduction <add>, %110, %cst_61 [1] : vector<8x32xf32> to vector<8xf32>
    %116 = vector.shape_cast %115 : vector<8xf32> to vector<8x1xf32>
    %cst_62 = arith.constant 3.200000e+01 : f32
    %117 = vector.broadcast %cst_62 : f32 to vector<8x1xf32>
    %118 = arith.divf %116, %117 : vector<8x1xf32>
    %119 = vector.broadcast %118 : vector<8x1xf32> to vector<8x32xf32>
    %120 = arith.subf %110, %119 : vector<8x32xf32>
    %121 = arith.mulf %120, %120 : vector<8x32xf32>
    %cst_63 = arith.constant dense<0.000000e+00> : vector<8xf32>
    %122 = vector.multi_reduction <add>, %121, %cst_63 [1] : vector<8x32xf32> to vector<8xf32>
    %123 = vector.shape_cast %122 : vector<8xf32> to vector<8x1xf32>
    %cst_64 = arith.constant 3.200000e+01 : f32
    %124 = vector.broadcast %cst_64 : f32 to vector<8x1xf32>
    %125 = arith.divf %123, %124 : vector<8x1xf32>
    %126 = vector.broadcast %118 : vector<8x1xf32> to vector<8x32xf32>
    %127 = arith.subf %110, %126 : vector<8x32xf32>
    %cst_65 = arith.constant 9.99999996E-13 : f32
    %128 = vector.broadcast %cst_65 : f32 to vector<8x1xf32>
    %129 = arith.addf %125, %128 : vector<8x1xf32>
    %130 = math.rsqrt %129 : vector<8x1xf32>
    %131 = vector.broadcast %130 : vector<8x1xf32> to vector<8x32xf32>
    %132 = arith.mulf %127, %131 : vector<8x32xf32>
    %133 = vector.broadcast %112 : vector<1x32xf32> to vector<8x32xf32>
    %134 = arith.mulf %132, %133 : vector<8x32xf32>
    %135 = vector.broadcast %114 : vector<1x32xf32> to vector<8x32xf32>
    %136 = arith.addf %134, %135 : vector<8x32xf32>
    %c0_66 = arith.constant 0 : index
    %c0_67 = arith.constant 0 : index
    %137 = vector.load %arg21[%c0_66, %c0_67] : memref<8x32xf32, #tpu.memory_space<vmem>>, vector<8x32xf32>
    tpu.vector_store %arg21[%c0_66, %c0_67], %136 {strides = array<i32>} : memref<8x32xf32, #tpu.memory_space<vmem>>, vector<8x32xf32>,
    %c1_i32 = arith.constant 1 : i32
    %138 = arith.cmpi eq, %arg1, %c1_i32 : i32
    %139 = arith.extui %138 : i1 to i32
    %c0_i32_68 = arith.constant 0 : i32
    %140 = arith.cmpi ne, %139, %c0_i32_68 : i32
    scf.if %140 {
      %c0_69 = arith.constant 0 : index
      %c0_70 = arith.constant 0 : index
      %141 = vector.load %arg18[%c0_69, %c0_70] : memref<32x128xbf16, #tpu.memory_space<vmem>>, vector<32x128xbf16>
      %142 = arith.truncf %136 : vector<8x32xf32> to vector<8x32xbf16>
      %cst_71 = arith.constant dense<0.000000e+00> : vector<8x128xf32>
      %143 = tpu.matmul %142, %141, %cst_71 {dimension_numbers = #tpu.dot_dimension_numbers<[1], [0], [0], [1], [0, 0, 1, 1], [], []>} : vector<8x32xbf16>, vector<32x128xbf16>, vector<8x128xf32> -> vector<8x128xf32>
      %c0_72 = arith.constant 0 : index
      %c0_73 = arith.constant 0 : index
      %144 = vector.load %arg19[%c0_72, %c0_73] : memref<1x128xf32, #tpu.memory_space<vmem>>, vector<1x128xf32>
      %145 = vector.broadcast %144 : vector<1x128xf32> to vector<8x128xf32>
      %146 = arith.addf %143, %145 : vector<8x128xf32>
      %cst_74 = arith.constant 0.000000e+00 : f32
      %147 = vector.broadcast %cst_74 : f32 to vector<8x128xf32>
      %148 = arith.maximumf %146, %147 : vector<8x128xf32>
      %c0_75 = arith.constant 0 : index
      %c0_76 = arith.constant 0 : index
      %149 = vector.load %arg20[%c0_75, %c0_76] : memref<8x128xf32, #tpu.memory_space<vmem>>, vector<8x128xf32>
      tpu.vector_store %arg20[%c0_75, %c0_76], %148 {strides = array<i32>} : memref<8x128xf32, #tpu.memory_space<vmem>>, vector<8x128xf32>,
    } else {
    }
    return
  }
  func.func @transform_0(%arg0: i32, %arg1: i32) -> (i32, i32) {
    %c0_i32 = arith.constant 0 : i32
    %c0_i32_0 = arith.constant 0 : i32
    return %arg0, %c0_i32 : i32, i32
  }
  func.func @transform_1(%arg0: i32, %arg1: i32) -> (i32, i32, i32) {
    %c0_i32 = arith.constant 0 : i32
    %c0_i32_0 = arith.constant 0 : i32
    %c0_i32_1 = arith.constant 0 : i32
    return %arg0, %c0_i32, %c0_i32_0 : i32, i32, i32
  }
  func.func @transform_2(%arg0: i32, %arg1: i32) -> (i32, i32) {
    %c0_i32 = arith.constant 0 : i32
    %c0_i32_0 = arith.constant 0 : i32
    %c0_i32_1 = arith.constant 0 : i32
    return %c0_i32, %c0_i32_0 : i32, i32
  }
  func.func @transform_3(%arg0: i32, %arg1: i32) -> (i32, i32) {
    %c0_i32 = arith.constant 0 : i32
    %c0_i32_0 = arith.constant 0 : i32
    %c0_i32_1 = arith.constant 0 : i32
    return %c0_i32, %c0_i32_0 : i32, i32
  }
  func.func @transform_4(%arg0: i32, %arg1: i32) -> (i32, i32, i32) {
    %c0_i32 = arith.constant 0 : i32
    %c0_i32_0 = arith.constant 0 : i32
    %c0_i32_1 = arith.constant 0 : i32
    return %arg1, %c0_i32, %c0_i32_0 : i32, i32, i32
  }
  func.func @transform_5(%arg0: i32, %arg1: i32) -> (i32, i32, i32) {
    %c0_i32 = arith.constant 0 : i32
    %c0_i32_0 = arith.constant 0 : i32
    %c0_i32_1 = arith.constant 0 : i32
    return %arg1, %c0_i32, %c0_i32_0 : i32, i32, i32
  }
  func.func @transform_6(%arg0: i32, %arg1: i32) -> (i32, i32, i32) {
    %c0_i32 = arith.constant 0 : i32
    %c0_i32_0 = arith.constant 0 : i32
    %c0_i32_1 = arith.constant 0 : i32
    return %arg1, %c0_i32, %c0_i32_0 : i32, i32, i32
  }
  func.func @transform_7(%arg0: i32, %arg1: i32) -> (i32, i32, i32) {
    %c0_i32 = arith.constant 0 : i32
    %c0_i32_0 = arith.constant 0 : i32
    %c0_i32_1 = arith.constant 0 : i32
    return %arg1, %c0_i32, %c0_i32_0 : i32, i32, i32
  }
  func.func @transform_8(%arg0: i32, %arg1: i32) -> (i32, i32, i32) {
    %c0_i32 = arith.constant 0 : i32
    %c0_i32_0 = arith.constant 0 : i32
    %c0_i32_1 = arith.constant 0 : i32
    return %arg1, %c0_i32, %c0_i32_0 : i32, i32, i32
  }
  func.func @transform_9(%arg0: i32, %arg1: i32) -> (i32, i32, i32) {
    %c0_i32 = arith.constant 0 : i32
    %c0_i32_0 = arith.constant 0 : i32
    %c0_i32_1 = arith.constant 0 : i32
    return %arg1, %c0_i32, %c0_i32_0 : i32, i32, i32
  }
  func.func @transform_10(%arg0: i32, %arg1: i32) -> (i32, i32, i32) {
    %c0_i32 = arith.constant 0 : i32
    %c0_i32_0 = arith.constant 0 : i32
    %c0_i32_1 = arith.constant 0 : i32
    return %arg1, %c0_i32, %c0_i32_0 : i32, i32, i32
  }
  func.func @transform_11(%arg0: i32, %arg1: i32) -> (i32, i32, i32) {
    %c0_i32 = arith.constant 0 : i32
    %c0_i32_0 = arith.constant 0 : i32
    %c0_i32_1 = arith.constant 0 : i32
    return %arg1, %c0_i32, %c0_i32_0 : i32, i32, i32
  }
  func.func @transform_12(%arg0: i32, %arg1: i32) -> (i32, i32, i32) {
    %c0_i32 = arith.constant 0 : i32
    %c0_i32_0 = arith.constant 0 : i32
    %c0_i32_1 = arith.constant 0 : i32
    return %arg1, %c0_i32, %c0_i32_0 : i32, i32, i32
  }
  func.func @transform_13(%arg0: i32, %arg1: i32) -> (i32, i32, i32) {
    %c0_i32 = arith.constant 0 : i32
    %c0_i32_0 = arith.constant 0 : i32
    %c0_i32_1 = arith.constant 0 : i32
    return %arg1, %c0_i32, %c0_i32_0 : i32, i32, i32
  }
  func.func @transform_14(%arg0: i32, %arg1: i32) -> (i32, i32, i32) {
    %c0_i32 = arith.constant 0 : i32
    %c0_i32_0 = arith.constant 0 : i32
    %c0_i32_1 = arith.constant 0 : i32
    return %arg1, %c0_i32, %c0_i32_0 : i32, i32, i32
  }
  func.func @transform_15(%arg0: i32, %arg1: i32) -> (i32, i32, i32) {
    %c0_i32 = arith.constant 0 : i32
    %c0_i32_0 = arith.constant 0 : i32
    %c0_i32_1 = arith.constant 0 : i32
    return %arg1, %c0_i32, %c0_i32_0 : i32, i32, i32
  }
  func.func @transform_16(%arg0: i32, %arg1: i32) -> (i32, i32) {
    %c0_i32 = arith.constant 0 : i32
    %c0_i32_0 = arith.constant 0 : i32
    %c0_i32_1 = arith.constant 0 : i32
    return %c0_i32, %c0_i32_0 : i32, i32
  }
  func.func @transform_17(%arg0: i32, %arg1: i32) -> (i32, i32) {
    %c0_i32 = arith.constant 0 : i32
    %c0_i32_0 = arith.constant 0 : i32
    %c0_i32_1 = arith.constant 0 : i32
    return %c0_i32, %c0_i32_0 : i32, i32
  }
  func.func @transform_18(%arg0: i32, %arg1: i32) -> (i32, i32) {
    %c0_i32 = arith.constant 0 : i32
    %c0_i32_0 = arith.constant 0 : i32
    return %arg0, %c0_i32 : i32, i32
  }
}

</mosaic_0001>

<bundles_post_ra>
// kernel: softmax_model_forward.1
= control target key start
LH: loop header
LB: loop body
LE: loop exit
PB: predicated region body
PF: predicated region fallthrough
CT: control target
= control target key end

     0   :  { %s2062_s27 = smov 0   ;;  %s2064_s28 = smov 0   ;;  %s2313_s0 = inlined_call_operand.vmem [shape: f32[16,32], index: 0, kind: input, shape index: {}]   ;;  %s2314_s1 = inlined_call_operand.vmem [shape: f32[2,1,8], index: 1, kind: input, shape index: {}]   ;;  %s2315_s2 = inlined_call_operand.vmem [shape: f32[1,32], index: 2, kind: input, shape index: {}]   ;;  %s2316_s3 = inlined_call_operand.vmem [shape: f32[1,32], index: 3, kind: input, shape index: {}]   ;;  %s2317_s4 = inlined_call_operand.vmem [shape: bf16[2,32,96], index: 4, kind: input, shape index: {}]   ;;  %s2318_s5 = inlined_call_operand.vmem [shape: f32[2,1,96], index: 5, kind: input, shape index: {}]   ;;  %s2319_s6 = inlined_call_operand.vmem [shape: bf16[2,32,32], index: 6, kind: input, shape index: {}]   ;;  %s2320_s7 = inlined_call_operand.vmem [shape: f32[2,1,32], index: 7, kind: input, shape index: {}]   ;;  %s2321_s8 = inlined_call_operand.vmem [shape: f32[2,1,32], index: 8, kind: input, shape index: {}]   ;;  %s2322_s9 = inlined_call_operand.vmem [shape: f32[2,1,32], index: 9, kind: input, shape index: {}]   ;;  %s2323_s10 = inlined_call_operand.vmem [shape: bf16[2,32,64], index: 10, kind: input, shape index: {}]   ;;  %s2324_s11 = inlined_call_operand.vmem [shape: f32[2,1,64], index: 11, kind: input, shape index: {}]   ;;  %s2325_s12 = inlined_call_operand.vmem [shape: bf16[2,64,32], index: 12, kind: input, shape index: {}]   ;;  %s2326_s13 = inlined_call_operand.vmem [shape: f32[2,1,32], index: 13, kind: input, shape index: {}]   ;;  %s2327_s14 = inlined_call_operand.vmem [shape: f32[2,1,32], index: 14, kind: input, shape index: {}]   ;;  %s2328_s15 = inlined_call_operand.vmem [shape: f32[2,1,32], index: 15, kind: input, shape index: {}]   ;;  %s2329_s16 = inlined_call_operand.vmem [shape: bf16[32,128], index: 16, kind: input, shape index: {}]   ;;  %s2330_s17 = inlined_call_operand.vmem [shape: f32[1,128], index: 17, kind: input, shape index: {}]   ;;  %s2331_s18 = inlined_call_operand.vmem [shape: f32[16,128], index: 18, kind: output, shape index: {}]  }
   0x1   :  { %2338 = sst [smem:[#allocation10_spill]] %s2313_s0  ;;  %s2066_s29 = smov 0  }
   0x2   :  { %2339 = sst [smem:[#allocation11_spill]] %s2314_s1  ;;  %s2068_s30 = smov 0  }
   0x3   :  { %2340 = sst [smem:[#allocation12_spill]] %s2315_s2  ;;  %s2070_s0 = smov 0  }
   0x4   :  { %2341 = sst [smem:[#allocation13_spill]] %s2316_s3 }
   0x5   :  { %2342 = sst [smem:[#allocation14_spill]] %s2317_s4 }
   0x6   :  { %2343 = sst [smem:[#allocation15_spill]] %s2319_s6 }
   0x7   :  { %2344 = sst [smem:[#allocation16_spill]] %s2323_s10 }
   0x8   :  { %2345 = sst [smem:[#allocation17_spill]] %s2324_s11 }
   0x9   :  { %2346 = sst [smem:[#allocation18_spill]] %s2328_s15 }
   0xa   :  { %2347 = sst [smem:[#allocation19_spill]] %s2329_s16 }
   0xb   :  { %2348 = sst [smem:[#allocation20_spill]] %s2330_s17 }
   0xc   :  { %2349 = sst [smem:[#allocation21_spill]] %s2331_s18 }
   0xd LB: > { %2350 = sst [smem:[#allocation3_spill]] %s1939_s27  ;;  %s37_s19 = sadd.s32 1, %s1947_s29  ;;  %s1955_s0 = sphi %s2070_s0, %s28_s0   ;;  %s1951_s30 = sphi %s2068_s30, %s2385_s30   ;;  %s1947_s29 = sphi %s2066_s29, %s2384_s29   ;;  %s1943_s28 = sphi %s2064_s28, %s2383_s28   ;;  %s1939_s27 = sphi %s2062_s27, %s2382_s27  }
   0xe   : > { %2351 = sst [smem:[#allocation4_spill]] %s1947_s29  ;;  %s40_s1 = sadd.s32 1, %s1951_s30 }
   0xf   : > { %2352 = sst [smem:[#allocation5_spill]] %s1951_s30  ;;  %p38_p0 = scmp.ge.s32.totalorder %s37_s19, 2 }
  0x10   : > { %2353 = sst [smem:[#allocation6_spill]] %s1955_s0  ;;  %p1695_p1 = scmp.ge.s32.totalorder %s1955_s0, 1 }
  0x11   : > { %p635_p2 = scmp.lt.s32.totalorder %s1955_s0, 5  ;;  %s2387_s19 = smov (%p38_p0, %s37_s19), 0 }
  0x12   : > { %2354 = sst [smem:[#allocation7_spill]] %s2387_s19  ;;  %s2389_s1 = smov (!%p38_p0, %s40_s1), %s1951_s30 }
  0x13   : > { %p636_p3 = pnand %p1695_p1, %p635_p2  ;;  %p42_p4 = scmp.ge.s32.totalorder %s2389_s1, 2 }
  0x15   : > { %s2391_s1 = smov (%p42_p4, %s2389_s1), 0  ;;  %639 = sbr.rel (%p636_p3) target bundleno = 2965 (0xb95), region = 92 }
  0x16   : > { %2355 = sst [smem:[#allocation8_spill]] %s2391_s1 }
  0x1a   : > { %p734_p5 = scmp.lt.s32.totalorder %s1943_s28, 1  ;;  %p741_p6 = scmp.lt.s32.totalorder %s1939_s27, 1 }
  0x1b   : > { %s2358_s1 = sld [smem:[#allocation10_spill]] }
  0x1c   : > { %s2393_s28 = smov (!%p734_p5, %s1943_s28), 1  ;;  %s2359_s4 = sld [smem:[#allocation14_spill]] }
  0x1d   : > { %2356 = sst [smem:[#allocation9_spill]] %s2393_s28  ;;  %s1696_s21 = sshll.u32 %s2393_s28, 3 }
  0x1e   : > { %s2098_s20 = scalar_select %p741_p6, %s1939_s27, 1 }
  0x1f   : > { %s2360_s6 = sld [smem:[#allocation15_spill]] }
  0x20   : > { %s1742_s30 = sshll.u32 %s2098_s20, 4  ;;  %s2361_s10 = sld [smem:[#allocation16_spill]] }
  0x21   : > { %s737_s19 = scalar_lea.vmem %s2358_s1, %s1696_s21  ;;  %s778_s25 = scalar_lea.vmem %s2326_s13, %s2098_s20 }
  0x22   : > { %s2112_s17 = scalar_lea.vmem %s2359_s4, %s1742_s30  ;;  %s781_s28 = scalar_lea.vmem %s2327_s14, %s2098_s20 }
  0x23   : > { %s2363_s4 = sld [smem:[#allocation18_spill]] }
  0x24   : > { %s2364_s27 = sld [smem:[#allocation21_spill]] }
  0x25   : > { %s2121_s22 = scalar_lea.vmem %s2360_s6, %s1742_s30  ;;  %s1745_s6 = sshll.u32 %s2098_s20, 5 }
  0x26   : > { %s2138_s16 = scalar_lea.vmem %s2361_s10, %s1742_s30  ;;  %s2152_s24 = scalar_lea.vmem %s2325_s12, %s1745_s6 }
  0x27   : > { %s2365_s2 = sld [smem:[#allocation3_spill]] }
  0x29   : > { %s784_s10 = scalar_lea.vmem %s2363_s4, %s2098_s20 }
  0x2a   : > { %s2165_s11 = scalar_lea.vmem %s2364_s27, %s1696_s21 }
  0x2d   : > { %p1706_p7 = scmp.ne.s32.totalorder %s2365_s2, 0 }
  0x2e   : > { %s2366_s27 = sld [smem:[#allocation12_spill]] (!%p1706_p7) }
  0x2f   : > { %793 = sbr.rel (%p1706_p7) target bundleno = 362 (0x16a), region = 96  ;;  %s2367_s23 = sld [smem:[#allocation13_spill]] (!%p1706_p7) }
  0x34   : > { %v794_v0 = vld [vmem:[%s737_s19] sm:$0xff]  ;;  %vm797_vm0 = vcmask 261120  }
  0x35   : > { %v798_v1 = vsel %vm797_vm0, %v794_v0, 0.0  ;;  %v1707_v11 = vld [vmem:[%s2366_s27] ss:$0 sm:$0xff] }
  0x36   : > { %799 = vadd.xlane.f32.xlu0 %v798_v1  ;;  %v1708_v13 = vld [vmem:[%s2367_s23] ss:$0 sm:$0xff] }
  0xbf   : > { %v800_v2 = vpop.xlane.xlu0 %799 }
  0xc0   : > { %v802_v3 = vmul.f32 0.03125, %v800_v2 }
  0xc2   : > { %v803_v4 = vsub.f32 %v794_v0, %v802_v3 }
  0xc4   : > { %v804_v5 = vmul.f32 %v803_v4, %v803_v4 }
  0xc6   : > { %v805_v6 = vsel %vm797_vm0, %v804_v5, 0.0 }
  0xc7   : > { %806 = vadd.xlane.f32.xlu0 %v805_v6 }
 0x150   : > { %v807_v7 = vpop.xlane.xlu0 %806 }
 0x151   : > { %v808_v8 = vmul.f32 0.03125, %v807_v7 }
 0x153   : > { %v809_v9 = vadd.f32 1e-12, %v808_v8 }
 0x155   : > { %1889 = vrsqrt.f32 %v809_v9 }
 0x162   : > { %v1890_v10 = vpop.eup %1889 }
 0x163   : > { %v811_v12 = vmul.f32 %v1890_v10, %v803_v4 }
 0x165   : > { %v818_v14 = vmul.f32 %v1707_v11, %v811_v12 }
 0x167   : > { %v825_v15 = vadd.f32 %v1708_v13, %v818_v14 }
 0x169   : > { %826 = vst.msk [vmem:[#allocation2] sm:$0xff] %vm797_vm0, %v825_v15 }
 0x16a PF: > { %v1891_v16 = vld [vmem:[%s2112_s17 + $0x8] sm:$0xff]   ;;  %v1957_v17 = vmov 0.0   ;;  %v1892_v18 = vld [vmem:[%s2112_s17] sm:$0xff]   ;;  %vm1958_vm1 = vmmov 0   ;;  %vm855_vm2 = vcmask 261120   ;;  %s2368_s26 = scalar_lea.vmem %s2318_s5, %s2098_s20  ;;  %s1959_s29 = smov 112   ;;  %v1001_v33 = vlaneseq }
 0x16b   : > { %1771 = vmatprep.subr.bf16.mxu0 %v1957_v17  ;;  %1779 = vmatprep.subr.bf16.mxu1 %v1957_v17  ;;  %v1709_v21 = vld [vmem:[%s2368_s26] ss:$0 sm:$0xff]  ;;  %s1960_s0 = smov 96   ;;  %s1961_s30 = smov 80   ;;  %vm903_vm3 = vcmask 130048   ;;  %vm1008_vm4 = vcmask 64512  }
 0x16c   : > { %1772 = vmatpush3.bf16.msra.mxu0 %v1891_v16  ;;  %1775 = vmatprep.mubr.msk.bf16.mxu0 %vm1958_vm1, %v1957_v17  ;;  %s2369_s3 = sld [smem:[#allocation9_spill]]  ;;  %v1002_v36 = vshrl.u32 %v1001_v33, 7  ;;  %s1962_s6 = smov 64   ;;  %vm1037_vm5 = vcmask 1043456   ;;  %v1893_v10 = vld [vmem:[%s2121_s22 + $0x8] sm:$0xff]   ;;  %v1894_v11 = vld [vmem:[%s2121_s22] sm:$0xff]  }
 0x16d   : > { %1773 = vmatprep.subr.bf16.mxu0 %v1957_v17  ;;  %1781 = vmatprep.mubr.msk.bf16.mxu1 %vm1958_vm1, %v1957_v17  ;;  %s2370_s2 = sld [smem:[#allocation11_spill]]  ;;  %s1963_s27 = smov 48   ;;  %vm1350_vm6 = vcmask 523264  }
 0x16e   : > { %v1003_v38 = vsub.s32 0, %v1002_v36  ;;  %s1964_s19 = smov 16   ;;  %s2372_s23 = scalar_lea.vmem %s2320_s7, %s2098_s20 }
 0x16f   : > { %s2373_s26 = scalar_lea.vmem %s2321_s8, %s2098_s20  ;;  %s2375_s15 = sld [smem:[#allocation17_spill]] }
 0x170   : > { %v2183_v19 = vld [vmem:[#allocation2] sm:$0xff]  ;;  %1774 = vmatpush3.bf16.msra.mxu0 %v1892_v18  ;;  %s2378_s22 = sld [smem:[#allocation3_spill]] }
 0x171   : > { %v835_v20 = vpack.c.bf16 %v2183_v19, %v2183_v19  ;;  %1785 = vmatprep.subr.bf16.mxu0 %v1957_v17 }
 0x173   : > { %1776 = vmatmul.mubr.msk.bf16.vlgmr.msra.gmra.mxu0 %vm855_vm2, %v835_v20  ;;  %s2371_s4 = scalar_lea.vmem %s2370_s2, %s2369_s3 }
 0x174   : > { %1787 = vmatprep.mubr.msk.bf16.mxu0 %vm1958_vm1, %v1957_v17  ;;  %v828_v34 = vld [vmem:[%s2371_s4] sm:$0x1] }
 0x175   : > { %v829_v35 = vsub.f32 1.0, %v828_v34  ;;  %s2376_s18 = scalar_lea.vmem %s2375_s15, %s2098_s20 }
 0x176   : > { %p1735_p8 = scmp.ne.s32.totalorder %s2378_s22, 1 }
 0x177   : > { %v830_v37 = vmul.f32 -1e+09, %v829_v35  ;;  %s2379_s17 = sld [smem:[#allocation19_spill]] (!%p1735_p8) }
 0x179   : > { %v1004_v39 = vrot.slane %v830_v37, %v1003_v38  ;;  %v1895_v38 = vld [vmem:[%s2138_s16 + $0x8] sm:$0xff]  }
 0x233   : > { %v893_v22 = vpop.f32.mrf.mxu0 }
 0x234   : > { %v894_v23 = vadd.f32 %v1709_v21, %v893_v22 }
 0x235   : > { %v1777_v24 = vpop.f32.mrf.mxu0 }
 0x236   : > { %v899_v25 = vpack.c.bf16 %v894_v23, %v894_v23 }
 0x237   : > { %v896_v26 = vpop.f32.mrf.mxu0 }
 0x238   : > { %950 = vrot.lane.b32.xlu1 %v899_v25, %s1959_s29  ;;  %901 = vrot.lane.b32.xlu0 %v899_v25, %s1960_s0 }
 0x239   : > { %v1778_v27 = vpop.f32.mrf.mxu0 }
 0x23c   : > { %952 = vrot.lane.b32.xlu0 %v899_v25, %s1961_s30 }
 0x2aa   : > { %v902_v28 = vpop.permute.xlu0 %901  ;;  %v951_v32 = vpop.permute.xlu1 %950 }
 0x2ab   : > { %v908_v29 = vsel %vm903_vm3, %v902_v28, 0 }
 0x2ac   : > { %1780 = vmatpush3.bf16.xpose.msra.mxu1 %v908_v29 }
 0x2ad   : > { %1791 = vmatprep.subr.bf16.mxu1 %v1957_v17 }
 0x2ae   : > { %v953_v30 = vpop.permute.xlu0 %952 }
 0x2af   : > { %v958_v31 = vsel %vm903_vm3, %v953_v30, 0 }
 0x2b0   : > { %1786 = vmatpush3.bf16.xpose.msra.mxu0 %v958_v31 }
 0x2b1   : > { %1797 = vmatprep.subr.bf16.mxu0 %v1957_v17 }
 0x2b3   : > { %1782 = vmatmul.mubr.msk.bf16.vlgmr.msra.gmra.mxu1 %vm903_vm3, %v899_v25 }
 0x2b4   : > { %1793 = vmatprep.mubr.msk.bf16.mxu1 %vm1958_vm1, %v1957_v17 }
 0x2b7   : > { %1788 = vmatmul.mubr.msk.bf16.vlgmr.msra.gmra.mxu0 %vm903_vm3, %v951_v32 }
 0x2b8   : > { %1799 = vmatprep.mubr.msk.bf16.mxu0 %vm1958_vm1, %v1957_v17 }
 0x373   : > { %v944_v40 = vpop.f32.mrf.mxu1 }
 0x374   : > { %v1006_v41 = vadd.f32 %v1004_v39, %v944_v40 }
 0x375   : > { %v1783_v42 = vpop.f32.mrf.mxu1 }
 0x376   : > { %v1009_v43 = vsel %vm1008_vm4, %v1006_v41, -inf }
 0x377   : > { %1010 = vmax.xlane.f32.xlu1 %v1009_v43  ;;  %v947_v44 = vpop.f32.mrf.mxu1  ;;  %v994_v45 = vpop.f32.mrf.mxu0  ;;  %v1721_v43 = vld [vmem:[%s2373_s26] ss:$0 sm:$0xff]  ;;  %s2380_s26 = sld [smem:[#allocation20_spill]] (!%p1735_p8) }
 0x378   : > { %v1007_v46 = vadd.f32 %v1004_v39, %v994_v45  ;;  %v1896_v39 = vld [vmem:[%s2138_s16] sm:$0xff]   ;;  %s2374_s16 = scalar_lea.vmem %s2322_s9, %s2098_s20 }
 0x379   : > { %v1784_v47 = vpop.f32.mrf.mxu1  ;;  %v1789_v48 = vpop.f32.mrf.mxu0  ;;  %v1722_v45 = vld [vmem:[%s2374_s16] ss:$0 sm:$0xff] }
 0x37a   : > { %v1012_v49 = vsel %vm1008_vm4, %v1007_v46, -inf }
 0x37b   : > { %1013 = vmax.xlane.f32.xlu0 %v1012_v49  ;;  %v997_v50 = vpop.f32.mrf.mxu0  ;;  %v1897_v49 = vld [vmem:[%s2152_s24 + $0x18] sm:$0xff]  }
 0x37c   : > { %v1898_v50 = vld [vmem:[%s2152_s24 + $0x10] sm:$0xff]  }
 0x37d   : > { %v1790_v51 = vpop.f32.mrf.mxu0 }
 0x37e   : > { %v1899_v51 = vld [vmem:[%s2152_s24 + $0x8] sm:$0xff]  }
 0x400   : > { %v1011_v52 = vpop.xlane.xlu1 %1010 }
 0x401   : > { %v1015_v53 = vsub.f32 %v1006_v41, %v1011_v52  ;;  %v1900_v52 = vld [vmem:[%s2152_s24] sm:$0xff]  }
 0x403   : > { %v1017_v54 = vmul.f32 1.442695, %v1015_v53  ;;  %v1723_v53 = vld [vmem:[%s2376_s18] ss:$0 sm:$0xff] }
 0x404   : > { %v1014_v55 = vpop.xlane.xlu0 %1013 }
 0x405   : > { %1901 = vpow2.f32 %v1017_v54  ;;  %v1016_v56 = vsub.f32 %v1007_v46, %v1014_v55 }
 0x407   : > { %v1019_v57 = vmul.f32 1.442695, %v1016_v56 }
 0x409   : > { %1903 = vpow2.f32 %v1019_v57 }
 0x412   : > { %v1902_v58 = vpop.eup %1901 }
 0x413   : > { %v1021_v59 = vsel %vm1008_vm4, %v1902_v58, 0.0 }
 0x414   : > { %1022 = vadd.xlane.f32.xlu0 %v1021_v59 }
 0x416   : > { %v1904_v60 = vpop.eup %1903 }
 0x417   : > { %v1024_v61 = vsel %vm1008_vm4, %v1904_v60, 0.0 }
 0x418   : > { %1025 = vadd.xlane.f32.xlu1 %v1024_v61 }
 0x429   : > { %1032 = vrot.lane.b32.xlu1 %v899_v25, %s1962_s6 }
 0x42a   : > { %1083 = vrot.lane.b32.xlu0 %v899_v25, %s1963_s27  ;;  %v1717_v25 = vld [vmem:[%s2372_s23] ss:$0 sm:$0xff] }
 0x49d   : > { %v1023_v62 = vpop.xlane.xlu0 %1022 }
 0x49e   : > { %1905 = vrcp.f32 %v1023_v62 }
 0x4a1   : > { %v1026_v63 = vpop.xlane.xlu1 %1025  ;;  %v1084_v0 = vpop.permute.xlu0 %1083 }
 0x4a2   : > { %1907 = vrcp.f32 %v1026_v63  ;;  %v1089_v1 = vsel %vm1037_vm5, %v1084_v0, 0 }
 0x4a3   : > { %1798 = vmatpush3.bf16.msra.mxu0 %v1089_v1 }
 0x4a4   : > { %1811 = vmatprep.subr.bf16.mxu0 %v1957_v17 }
 0x4a5   : > { %v1033_v2 = vpop.permute.xlu1 %1032 }
 0x4a6   : > { %v1039_v3 = vsel %vm1037_vm5, %v1033_v2, 0 }
 0x4a7   : > { %1792 = vmatpush3.bf16.msra.mxu1 %v1039_v3 }
 0x4a8   : > { %1803 = vmatprep.subr.bf16.mxu1 %v1957_v17 }
 0x4ab   : > { %v1906_v4 = vpop.eup %1905 }
 0x4ac   : > { %v1029_v6 = vmul.f32 %v1906_v4, %v1902_v58  ;;  %v1727_v4 = vld [vmem:[%s778_s25] ss:$0 sm:$0xff] }
 0x4af   : > { %v1908_v5 = vpop.eup %1907 }
 0x4b0   : > { %v1030_v7 = vmul.f32 %v1908_v5, %v1904_v60 }
 0x4b2   : > { %v1031_v8 = vpack.c.bf16 %v1030_v7, %v1029_v6 }
 0x4b4   : > { %1794 = vmatmul.mubr.msk.bf16.vlgmr.msra.gmra.mxu1 %vm1008_vm4, %v1031_v8  ;;  %v1082_v9 = vrot.slane %v1031_v8, 4 }
 0x4b5   : > { %1807 = vmatprep.mubr.msk.bf16.mxu1 %vm1958_vm1, %v1957_v17  ;;  %1804 = vmatpush3.bf16.msra.mxu1 %v1893_v10 }
 0x4b6   : > { %1800 = vmatmul.mubr.msk.bf16.vlgmr.msra.gmra.mxu0 %vm1008_vm4, %v1082_v9  ;;  %1805 = vmatprep.subr.bf16.mxu1 %v1957_v17 }
 0x4b7   : > { %1815 = vmatprep.mubr.msk.bf16.mxu0 %vm1958_vm1, %v1957_v17  ;;  %1812 = vmatpush3.bf16.msra.mxu0 %v1895_v38 }
 0x4b8   : > { %1813 = vmatprep.subr.bf16.mxu0 %v1957_v17 }
 0x4b9   : > { %1806 = vmatpush3.bf16.msra.mxu1 %v1894_v11 }
 0x4ba   : > { %1819 = vmatprep.subr.bf16.mxu1 %v1957_v17 }
 0x4bb   : > { %1814 = vmatpush3.bf16.msra.mxu0 %v1896_v39 }
 0x574   : > { %v1075_v12 = vpop.f32.mrf.mxu1 }
 0x576   : > { %v1795_v13 = vpop.f32.mrf.mxu1  ;;  %v1125_v14 = vpop.f32.mrf.mxu0 }
 0x577   : > { %1132 = vrot.lane.b32.xlu1 %v1125_v14, %s1964_s19 }
 0x578   : > { %v1078_v15 = vpop.f32.mrf.mxu1  ;;  %v1801_v16 = vpop.f32.mrf.mxu0 }
 0x57a   : > { %v1796_v18 = vpop.f32.mrf.mxu1  ;;  %v1128_v20 = vpop.f32.mrf.mxu0 }
 0x57c   : > { %v1802_v21 = vpop.f32.mrf.mxu0 }
 0x5e9   : > { %v1133_v22 = vpop.permute.xlu1 %1132 }
 0x5ea   : > { %v1135_v23 = vsel %vm903_vm3, %v1075_v12, %v1133_v22 }
 0x5eb   : > { %v1140_v24 = vpack.c.bf16 %v1135_v23, %v1135_v23  ;;  %v1733_v23 = vld [vmem:[%s781_s28] ss:$0 sm:$0xff] }
 0x5ed   : > { %1808 = vmatmul.mubr.msk.bf16.vlgmr.msra.gmra.mxu1 %vm855_vm2, %v1140_v24 }
 0x5ee   : > { %1827 = vmatprep.mubr.msk.bf16.mxu1 %vm1958_vm1, %v1957_v17  ;;  %1820 = vmatpush3.bf16.msra.mxu1 %v1897_v49 }
 0x5ef   : > { %1821 = vmatprep.subr.bf16.mxu1 %v1957_v17 }
 0x5f2   : > { %1822 = vmatpush3.bf16.msra.mxu1 %v1898_v50 }
 0x5f3   : > { %1823 = vmatprep.subr.bf16.mxu1 %v1957_v17 }
 0x5f6   : > { %1824 = vmatpush3.bf16.msra.mxu1 %v1899_v51 }
 0x5f7   : > { %1825 = vmatprep.subr.bf16.mxu1 %v1957_v17 }
 0x5fa   : > { %1826 = vmatpush3.bf16.msra.mxu1 %v1900_v52 }
 0x6ad   : > { %v1197_v26 = vpop.f32.mrf.mxu1 }
 0x6ae   : > { %v1198_v27 = vadd.f32 %v1717_v25, %v1197_v26  ;;  %v1734_v25 = vld [vmem:[%s784_s10] ss:$0 sm:$0xff] }
 0x6af   : > { %v1809_v28 = vpop.f32.mrf.mxu1 }
 0x6b0   : > { %v1203_v29 = vadd.f32 %v1198_v27, %v2183_v19 }
 0x6b1   : > { %v1200_v30 = vpop.f32.mrf.mxu1 }
 0x6b2   : > { %v1206_v31 = vsel %vm855_vm2, %v1203_v29, 0.0 }
 0x6b3   : > { %1207 = vadd.xlane.f32.xlu0 %v1206_v31  ;;  %v1810_v32 = vpop.f32.mrf.mxu1 }
 0x73c   : > { %v1208_v33 = vpop.xlane.xlu0 %1207 }
 0x73d   : > { %v1210_v34 = vmul.f32 0.03125, %v1208_v33 }
 0x73f   : > { %v1211_v35 = vsub.f32 %v1203_v29, %v1210_v34 }
 0x741   : > { %v1212_v36 = vmul.f32 %v1211_v35, %v1211_v35 }
 0x743   : > { %v1213_v37 = vsel %vm855_vm2, %v1212_v36, 0.0 }
 0x744   : > { %1214 = vadd.xlane.f32.xlu1 %v1213_v37 }
 0x7cd   : > { %v1215_v19 = vpop.xlane.xlu1 %1214 }
 0x7ce   : > { %v1216_v40 = vmul.f32 0.03125, %v1215_v19 }
 0x7d0   : > { %v1217_v41 = vadd.f32 1e-12, %v1216_v40 }
 0x7d2   : > { %1909 = vrsqrt.f32 %v1217_v41 }
 0x7df   : > { %v1910_v42 = vpop.eup %1909 }
 0x7e0   : > { %v1219_v44 = vmul.f32 %v1910_v42, %v1211_v35 }
 0x7e2   : > { %v1226_v46 = vmul.f32 %v1721_v43, %v1219_v44 }
 0x7e4   : > { %v1233_v47 = vadd.f32 %v1722_v45, %v1226_v46 }
 0x7e6   : > { %v1238_v48 = vpack.c.bf16 %v1233_v47, %v1233_v47 }
 0x7e8   : > { %1816 = vmatmul.mubr.msk.bf16.vlgmr.msra.gmra.mxu0 %vm855_vm2, %v1238_v48 }
 0x8a8   : > { %v1295_v54 = vpop.f32.mrf.mxu0 }
 0x8a9   : > { %v1296_v55 = vadd.f32 %v1723_v53, %v1295_v54 }
 0x8aa   : > { %v1817_v56 = vpop.f32.mrf.mxu0 }
 0x8ab   : > { %v1301_v57 = vmul.f32 %v1296_v55, %v1296_v55 }
 0x8ac   : > { %v1298_v58 = vpop.f32.mrf.mxu0 }
 0x8ad   : > { %v1302_v59 = vmul.f32 %v1301_v57, %v1296_v55 }
 0x8ae   : > { %v1818_v60 = vpop.f32.mrf.mxu0 }
 0x8af   : > { %v1303_v61 = vmul.f32 0.044715, %v1302_v59 }
 0x8b1   : > { %v1304_v62 = vadd.f32 %v1303_v61, %v1296_v55 }
 0x8b3   : > { %v1305_v63 = vmul.f32 0.7978846, %v1304_v62 }
 0x8b5   : > { %1911 = vtanh.f32 %v1305_v63 }
 0x8c2   : > { %v1912_v17 = vpop.eup %1911 }
 0x8c3   : > { %v1307_v0 = vadd.f32 1.0, %v1912_v17 }
 0x8c5   : > { %v1308_v1 = vmul.f32 0.5, %v1307_v0 }
 0x8c7   : > { %v1309_v2 = vmul.f32 %v1308_v1, %v1296_v55 }
 0x8c9   : > { %v1318_v3 = vpack.c.bf16 %v1309_v2, %v1309_v2 }
 0x8cb   : > { %1828 = vmatmul.mubr.msk.bf16.vlgmr.msra.gmra.mxu1 %vm1350_vm6, %v1318_v3 }
 0x98b   : > { %v1388_v5 = vpop.f32.mrf.mxu1 }
 0x98c   : > { %v1389_v6 = vadd.f32 %v1727_v4, %v1388_v5 }
 0x98d   : > { %v1829_v7 = vpop.f32.mrf.mxu1 }
 0x98e   : > { %v1394_v8 = vadd.f32 %v1389_v6, %v1233_v47 }
 0x98f   : > { %v1391_v9 = vpop.f32.mrf.mxu1 }
 0x990   : > { %v1397_v10 = vsel %vm855_vm2, %v1394_v8, 0.0 }
 0x991   : > { %1398 = vadd.xlane.f32.xlu0 %v1397_v10  ;;  %v1830_v11 = vpop.f32.mrf.mxu1 }
 0xa1a   : > { %v1399_v12 = vpop.xlane.xlu0 %1398 }
 0xa1b   : > { %v1400_v13 = vmul.f32 0.03125, %v1399_v12 }
 0xa1d   : > { %v1401_v14 = vsub.f32 %v1394_v8, %v1400_v13 }
 0xa1f   : > { %v1402_v15 = vmul.f32 %v1401_v14, %v1401_v14 }
 0xa21   : > { %v1403_v16 = vsel %vm855_vm2, %v1402_v15, 0.0 }
 0xa22   : > { %1404 = vadd.xlane.f32.xlu0 %v1403_v16 }
 0xaab   : > { %v1405_v18 = vpop.xlane.xlu0 %1404 }
 0xaac   : > { %v1406_v20 = vmul.f32 0.03125, %v1405_v18 }
 0xaae   : > { %v1407_v21 = vadd.f32 1e-12, %v1406_v20 }
 0xab0   : > { %1913 = vrsqrt.f32 %v1407_v21 }
 0xabd   : > { %v1914_v22 = vpop.eup %1913 }
 0xabe   : > { %v1409_v24 = vmul.f32 %v1914_v22, %v1401_v14 }
 0xac0   : > { %v1416_v26 = vmul.f32 %v1733_v23, %v1409_v24  ;;  %1428 = sbr.rel (%p1735_p8) target bundleno = 2965 (0xb95), region = 100 }
 0xac2   : > { %v1423_v27 = vadd.f32 %v1734_v25, %v1416_v26 }
 0xac4   : > { %1424 = vst.msk [vmem:[#allocation2] sm:$0xff] %vm855_vm2, %v1423_v27 }
 0xac5   : > { %v1915_v28 = vld [vmem:[%s2379_s17 + $0x8] sm:$0xff]   ;;  %v1965_v29 = vmov 0.0   ;;  %v1916_v30 = vld [vmem:[%s2379_s17] sm:$0xff]   ;;  %vm1966_vm7 = vmmov 0   ;;  %v1433_v31 = vpack.c.bf16 %v1423_v27, %v1423_v27 }
 0xac6   : > { %1831 = vmatprep.subr.bf16.mxu0 %v1965_v29  ;;  %1835 = vmatprep.mubr.msk.bf16.mxu0 %vm1966_vm7, %v1965_v29  ;;  %v1736_v32 = vld [vmem:[%s2380_s26] ss:$0 sm:$0xff] }
 0xac7   : > { %1832 = vmatpush3.bf16.msra.mxu0 %v1915_v28 }
 0xac8   : > { %1833 = vmatprep.subr.bf16.mxu0 %v1965_v29 }
 0xacb   : > { %1834 = vmatpush3.bf16.msra.mxu0 %v1916_v30 }
 0xace   : > { %1836 = vmatmul.mubr.msk.bf16.vlgmr.msra.gmra.mxu0 %vm855_vm2, %v1433_v31 }
 0xb8e   : > { %v1490_v33 = vpop.f32.mrf.mxu0 }
 0xb8f   : > { %v1491_v34 = vadd.f32 %v1736_v32, %v1490_v33 }
 0xb90   : > { %v1837_v35 = vpop.f32.mrf.mxu0 }
 0xb91   : > { %v1496_v36 = vmax.f32 %v1491_v34, 0.0 }
 0xb92   : > { %v1493_v37 = vpop.f32.mrf.mxu0 }
 0xb93   : > { %1497 = vst [vmem:[%s2165_s11] sm:$0xff] %v1496_v36 }
 0xb94   : > { %v1838_v38 = vpop.f32.mrf.mxu0 }
 0xb95 PF: > { %s2381_s29 = sld [smem:[#allocation6_spill]] }
 0xb96   : > { %s2382_s27 = sld [smem:[#allocation4_spill]] }
 0xb97   : > { %s2383_s28 = sld [smem:[#allocation5_spill]] }
 0xb98   : > { %s2385_s30 = sld [smem:[#allocation8_spill]] }
 0xb9b   : > { %s28_s0 = sadd.s32 1, %s2381_s29   ;;  %s2384_s29 = sld [smem:[#allocation7_spill]] }
 0xb9c   : > { %p25_p9 = scmp.ge.s32.totalorder %s28_s0, 6  }
 0xb9e   :  { %27 = sbr.rel (!%p25_p9) target bundleno = 13 (0xd), region = 169 }

</bundles_post_ra>
